<compile_context>
chip_gen: v6e
topology: v6e:2x2x1
jax: 0.10.0
libtpu: 0.0.40
codegen_flags: <defaults>
</compile_context>

<pallas_src>
import math

import jax
import jax.numpy as jnp
from jax.experimental import pallas as pl
from jax.experimental.pallas import tpu as pltpu

_VMEM_LIMIT_CACHE = None


def _vmem_limit():
    """Per-generation scoped-VMEM cap."""
    global _VMEM_LIMIT_CACHE
    if _VMEM_LIMIT_CACHE is None:
        try:
            kind = jax.devices()[0].device_kind.lower()
        except Exception:
            kind = ""
        if "v7" in kind:
            _VMEM_LIMIT_CACHE = 44 * 1024 * 1024   # 64 MiB physical/TC, leave headroom
        elif "v5" in kind or "v6" in kind:
            _VMEM_LIMIT_CACHE = 100 * 1024 * 1024  # 128 MiB physical, spend on tiles
        else:
            _VMEM_LIMIT_CACHE = 64 * 1024 * 1024
    return _VMEM_LIMIT_CACHE


def _pick_tile(dim, preferred, align):
    """Largest tile <= preferred that is a multiple of `align` and divides `dim`;
    falls back to the full dimension (always a legal BlockSpec block)."""
    if dim <= preferred:
        return dim
    t = (preferred // align) * align
    while t >= align:
        if dim % t == 0:
            return t
        t -= align
    return dim


# --------------------- tiled matmul (+bias/act/residual) --------------------

def _make_matmul_kernel(activation, has_bias, has_resid):
    def kernel(*refs):
        x_ref, w_ref = refs[0], refs[1]
        pos = 2
        b_ref = None
        r_ref = None
        if has_bias:
            b_ref = refs[pos]; pos += 1
        if has_resid:
            r_ref = refs[pos]; pos += 1
        o_ref = refs[pos]
        acc_ref = refs[pos + 1]

        k_id = pl.program_id(2)
        nk = pl.num_programs(2)

        @pl.when(k_id == 0)
        def _():
            acc_ref[...] = jnp.zeros_like(acc_ref)

        # bf16 x and bf16 w straight into the MXU, f32 accumulation (no per-step cast).
        acc_ref[...] += jnp.dot(x_ref[...], w_ref[...],
                                preferred_element_type=jnp.float32)

        @pl.when(k_id == nk - 1)
        def _():
            acc = acc_ref[...]
            if has_bias:
                acc = acc + b_ref[...].astype(jnp.float32)
            if activation == "gelu":
                # TODO(synk): HF GPT-NeoX default act is exact erf-GELU; tanh approx used.
                acc = jax.nn.gelu(acc, approximate=True)
            if has_resid:
                acc = acc + r_ref[...].astype(jnp.float32)
            o_ref[...] = acc.astype(o_ref.dtype)

    return kernel


def linear(x, w, b=None, residual=None, activation=None, *, out_dtype=None,
           tm=512, tn=512, tk=512):
    """x: (M, K) bf16, w: (K, N) bf16, b: (N,)|None, residual: (M, N)|None."""
    M, K = x.shape
    K2, N = w.shape
    assert K == K2
    tm = _pick_tile(M, tm, 8)
    tn = _pick_tile(N, tn, 128)
    tk = _pick_tile(K, tk, 128)
    grid = (M // tm, N // tn, K // tk)
    out_dtype = out_dtype or x.dtype

    in_specs = [pl.BlockSpec((tm, tk), lambda i, j, k: (i, k)),
                pl.BlockSpec((tk, tn), lambda i, j, k: (k, j))]
    args = [x, w]
    if b is not None:
        in_specs.append(pl.BlockSpec((1, tn), lambda i, j, k: (0, j)))
        args.append(b.reshape(1, N).astype(jnp.float32))
    if residual is not None:
        in_specs.append(pl.BlockSpec((tm, tn), lambda i, j, k: (i, j)))
        args.append(residual)

    kern = _make_matmul_kernel(activation, b is not None, residual is not None)
    return pl.pallas_call(
        kern,
        out_shape=jax.ShapeDtypeStruct((M, N), out_dtype),
        grid=grid,
        in_specs=in_specs,
        out_specs=pl.BlockSpec((tm, tn), lambda i, j, k: (i, j)),
        scratch_shapes=[pltpu.VMEM((tm, tn), jnp.float32)],
        compiler_params=pltpu.CompilerParams(
            dimension_semantics=("parallel", "parallel", "arbitrary"),
            vmem_limit_bytes=_vmem_limit()),
    )(*args)


# ---------------------- fused LayerNorm + matmul kernel ----------------------

def _make_ln_matmul_kernel(eps, activation, has_bias):
    def kernel(*refs):
        x_ref, g_ref, bln_ref, w_ref = refs[:4]
        pos = 4
        b_ref = None
        if has_bias:
            b_ref = refs[pos]; pos += 1
        o_ref = refs[pos]
        y_ref = refs[pos + 1]            # (tm, K) bf16 scratch with normalized rows

        # LayerNorm is computed once per row-tile (j == 0) and reused across all
        # N tiles; the x block index is constant in j so it is not re-DMA'd.
        @pl.when(pl.program_id(1) == 0)
        def _():
            x = x_ref[...].astype(jnp.float32)
            mu = jnp.mean(x, axis=-1, keepdims=True)
            var = jnp.mean(jnp.square(x - mu), axis=-1, keepdims=True)
            y = (x - mu) * jax.lax.rsqrt(var + eps)
            y = y * g_ref[...].astype(jnp.float32) + bln_ref[...].astype(jnp.float32)
            y_ref[...] = y.astype(y_ref.dtype)

        acc = jnp.dot(y_ref[...], w_ref[...], preferred_element_type=jnp.float32)
        if has_bias:
            acc = acc + b_ref[...].astype(jnp.float32)
        if activation == "gelu":
            # TODO(synk): HF GPT-NeoX default act is exact erf-GELU; tanh approx used.
            acc = jax.nn.gelu(acc, approximate=True)
        o_ref[...] = acc.astype(o_ref.dtype)

    return kernel


def ln_linear(x, g, bln, w, b=None, activation=None, eps=1e-5, *, out_dtype=None,
              tm=512, tn=512):
    """Fused LayerNorm(x) @ w (+ bias, + activation). K is kept whole in-block."""
    M, K = x.shape
    K2, N = w.shape
    assert K == K2
    tm = _pick_tile(M, tm, 8)
    tn = _pick_tile(N, tn, 128)
    grid = (M // tm, N // tn)
    out_dtype = out_dtype or x.dtype

    in_specs = [pl.BlockSpec((tm, K), lambda i, j: (i, 0)),
                pl.BlockSpec((1, K), lambda i, j: (0, 0)),
                pl.BlockSpec((1, K), lambda i, j: (0, 0)),
                pl.BlockSpec((K, tn), lambda i, j: (0, j))]
    args = [x, g.reshape(1, K).astype(jnp.float32),
            bln.reshape(1, K).astype(jnp.float32), w]
    if b is not None:
        in_specs.append(pl.BlockSpec((1, tn), lambda i, j: (0, j)))
        args.append(b.reshape(1, N).astype(jnp.float32))

    kern = _make_ln_matmul_kernel(eps, activation, b is not None)
    return pl.pallas_call(
        kern,
        out_shape=jax.ShapeDtypeStruct((M, N), out_dtype),
        grid=grid,
        in_specs=in_specs,
        out_specs=pl.BlockSpec((tm, tn), lambda i, j: (i, j)),
        scratch_shapes=[pltpu.VMEM((tm, K), jnp.bfloat16)],
        compiler_params=pltpu.CompilerParams(
            dimension_semantics=("parallel", "arbitrary"),
            vmem_limit_bytes=_vmem_limit()),
    )(*args)


# ------------------- multi-head flash (causal) attention ---------------------
# q/k/v/out layout: (B, S, H) with heads contiguous on the lane axis
# (head h occupies columns [h*hd, (h+1)*hd)).  Heads are processed with an
# in-kernel static loop so the output store is lane-dense (last dim = H).

def _make_mha_kernel(num_heads, head_dim, scale, tq, tk, nk):
    def kernel(q_ref, k_ref, v_ref, o_ref, qs_ref, m_sc, l_sc, acc_sc):
        qi = pl.program_id(1)
        ki = pl.program_id(2)
        q_start = qi * tq
        k_start = ki * tk

        @pl.when(ki == 0)
        def _():
            # Fold 1/sqrt(d) into q once per (batch, q-tile); cast hoisted out
            # of the kv loop.
            qs_ref[...] = (q_ref[0].astype(jnp.float32) * scale).astype(qs_ref.dtype)
            m_sc[...] = jnp.full_like(m_sc, -1e30)
            l_sc[...] = jnp.zeros_like(l_sc)
            acc_sc[...] = jnp.zeros_like(acc_sc)

        # Skip key blocks entirely above the causal diagonal (their K/V DMA is
        # also elided via the clamped index_map in the wrapper).
        @pl.when(k_start <= q_start + tq - 1)
        def _():
            # Causal mask shared by every head for this (q, k) tile pair.
            q_pos = q_start + jax.lax.broadcasted_iota(jnp.int32, (tq, tk), 0)
            k_pos = k_start + jax.lax.broadcasted_iota(jnp.int32, (tq, tk), 1)
            mask_bias = jnp.where(k_pos <= q_pos, jnp.float32(0.0), jnp.float32(-1e9))

            for h in range(num_heads):
                lo = h * head_dim
                hi = lo + head_dim
                q_h = qs_ref[:, lo:hi]                 # (tq, hd) bf16, pre-scaled
                k_h = k_ref[0, :, lo:hi]               # (tk, hd) bf16
                v_h = v_ref[0, :, lo:hi]               # (tk, hd) bf16
                s = jax.lax.dot_general(q_h, k_h, (((1,), (1,)), ((), ())),
                                        preferred_element_type=jnp.float32)
                s = s + mask_bias
                m_prev = m_sc[h]
                m_new = jnp.maximum(m_prev, jnp.max(s, axis=-1, keepdims=True))
                alpha = jnp.exp(m_prev - m_new)
                p = jnp.exp(s - m_new)
                l_sc[h] = alpha * l_sc[h] + jnp.sum(p, axis=-1, keepdims=True)
                acc_sc[h] = alpha * acc_sc[h] + jnp.dot(
                    p.astype(jnp.bfloat16), v_h,
                    preferred_element_type=jnp.float32)
                m_sc[h] = m_new

        @pl.when(ki == nk - 1)
        def _():
            outs = []
            for h in range(num_heads):
                inv_l = pl.reciprocal(l_sc[h], approx=True)
                outs.append(acc_sc[h] * inv_l)
            # Single lane-dense (tq, H) store for all heads.
            o_ref[0] = jnp.concatenate(outs, axis=-1).astype(o_ref.dtype)

    return kernel


def mha_attention(q, k, v, num_heads, head_dim, scale, *, tq=256, tk=512):
    """q,k,v: (B, S, H) bf16 head-contiguous -> (B, S, H) bf16, causal."""
    B, S, H = q.shape
    assert H == num_heads * head_dim
    tq = _pick_tile(S, tq, 8)
    tk = _pick_tile(S, tk, 8)
    nq, nk = S // tq, S // tk
    kern = _make_mha_kernel(num_heads, head_dim, scale, tq, tk, nk)

    def kv_map(b, qi, ki):
        # Clamp to the last causally-needed block: steps skipped by the causal
        # pl.when alias an already-resident block and generate no new DMA.
        last = (qi * tq + tq - 1) // tk
        return (b, jnp.minimum(ki, last), 0)

    return pl.pallas_call(
        kern,
        out_shape=jax.ShapeDtypeStruct((B, S, H), q.dtype),
        grid=(B, nq, nk),
        in_specs=[pl.BlockSpec((1, tq, H), lambda b, qi, ki: (b, qi, 0)),
                  pl.BlockSpec((1, tk, H), kv_map),
                  pl.BlockSpec((1, tk, H), kv_map)],
        out_specs=pl.BlockSpec((1, tq, H), lambda b, qi, ki: (b, qi, 0)),
        scratch_shapes=[pltpu.VMEM((tq, H), jnp.bfloat16),
                        pltpu.VMEM((num_heads, tq, 1), jnp.float32),
                        pltpu.VMEM((num_heads, tq, 1), jnp.float32),
                        pltpu.VMEM((num_heads, tq, head_dim), jnp.float32)],
        compiler_params=pltpu.CompilerParams(
            dimension_semantics=("parallel", "parallel", "arbitrary"),
            vmem_limit_bytes=_vmem_limit()),
    )(q, k, v)


# ------------------------------ JAX glue ----------------------------------

def rotary_cos_sin(positions, rotary_ndims, base=10000.0):
    inv_freq = 1.0 / (base ** (jnp.arange(0, rotary_ndims, 2, dtype=jnp.float32)
                               / rotary_ndims))
    freqs = positions[:, None].astype(jnp.float32) * inv_freq[None, :]   # (S, rnd/2)
    emb = jnp.concatenate([freqs, freqs], axis=-1)                       # (S, rnd)
    return jnp.cos(emb), jnp.sin(emb)


def _rotate_half(x):
    d = x.shape[-1] // 2
    return jnp.concatenate([-x[..., d:], x[..., :d]], axis=-1)


def apply_rotary(q, k, cos, sin, rotary_ndims):
    """q, k: (B, S, nH, hd) bf16; cos/sin: (S, rnd) f32."""
    # TODO(synk): rotary could be fused into the attention kernel (pltpu.roll on
    # the XLU, cos/sin streamed per tile); kept as JAX glue on the rnd slice only.
    q_rot, q_pass = q[..., :rotary_ndims], q[..., rotary_ndims:]
    k_rot, k_pass = k[..., :rotary_ndims], k[..., rotary_ndims:]
    c = cos[None, :, None, :]
    s = sin[None, :, None, :]
    q_rot = q_rot.astype(jnp.float32)
    k_rot = k_rot.astype(jnp.float32)
    q_rot = q_rot * c + _rotate_half(q_rot) * s
    k_rot = k_rot * c + _rotate_half(k_rot) * s
    q = jnp.concatenate([q_rot.astype(q.dtype), q_pass], axis=-1)
    k = jnp.concatenate([k_rot.astype(k.dtype), k_pass], axis=-1)
    return q, k


def gpt_neox_layer(x, p, cos, sin, cfg):
    """One GPT-NeoX block with parallel residual (HF default). x: (B,S,H) bf16."""
    B, S, H = x.shape
    nH, hd = cfg["num_heads"], cfg["head_dim"]
    x2 = x.reshape(B * S, H)

    # --- attention branch: fused LN1 + QKV projection ---
    qkv = ln_linear(x2, p["ln1_g"], p["ln1_b"], p["qkv_w"], p["qkv_b"],
                    eps=cfg["eps"])                                  # (B*S, 3H) bf16
    qkv = qkv.reshape(B, S, nH, 3 * hd)                              # HF fused-QKV layout
    q = qkv[..., :hd]                                                # (B, S, nH, hd)
    k = qkv[..., hd:2 * hd]
    v = qkv[..., 2 * hd:]
    q, k = apply_rotary(q, k, cos, sin, cfg["rotary_ndims"])
    # Head-contiguous (B, S, H) layout for the attention kernel: plain reshapes,
    # no head-split/merge transposes (those HBM round trips are gone).
    q = q.reshape(B, S, H)
    k = k.reshape(B, S, H)
    v = v.reshape(B, S, H)
    scale = 1.0 / math.sqrt(hd)
    attn = mha_attention(q, k, v, nH, hd, scale)                     # (B, S, H) bf16
    attn2 = attn.reshape(B * S, H)
    # dense projection with the residual x fused into the epilogue
    h1 = linear(attn2, p["attn_dense_w"], p["attn_dense_b"], residual=x2)

    # --- MLP branch (parallel residual): fused LN2 + FC1 + GELU, FC2 + residual ---
    mlp = ln_linear(x2, p["ln2_g"], p["ln2_b"], p["fc1_w"], p["fc1_b"],
                    activation="gelu", eps=cfg["eps"])
    out = linear(mlp, p["fc2_w"], p["fc2_b"], residual=h1)           # x + attn + mlp

    return out.reshape(B, S, H)


def adapter_model_forward(params, x_tokens, cfg):
    B, _ = x_tokens.shape
    H = cfg["hidden"]
    tok_emb = jnp.take(params["token_emb"], x_tokens, axis=0)        # (B, S_tok, H)
    adapter = jnp.broadcast_to(params["adapter"][None],
                               (B, cfg["adapter_size"], H))
    # TODO(synk): adapter_dropout is identity in eval/inference mode; checkpoint_sequential
    # only affects backward-pass memory, forward semantics unchanged.
    seq = jnp.concatenate([adapter, tok_emb], axis=1).astype(jnp.bfloat16)  # (B, S, H)
    S = seq.shape[1]

    pos = jnp.arange(S)                          # WrapLayer: position_ids[:, :S]
    cos, sin = rotary_cos_sin(pos, cfg["rotary_ndims"])

    h = seq
    for lp in params["layers"]:
        h = gpt_neox_layer(h, lp, cos, sin, cfg)

    # final_layer_norm fused into the vocab projection; CastOutputToFloat -> f32.
    h2 = h.reshape(B * S, H)
    logits = ln_linear(h2, params["lnf_g"], params["lnf_b"], params["embed_out_w"],
                       None, eps=cfg["eps"], out_dtype=jnp.float32)
    return logits.reshape(B, S, cfg["vocab"])


# --------------------------- parameter init --------------------------------

def init_params(key, cfg):
    H, V, I = cfg["hidden"], cfg["vocab"], cfg["intermediate"]

    def nrm(k, shape, scale=0.02):
        return jax.random.normal(k, shape, jnp.float32) * scale

    keys = jax.random.split(key, 4 + cfg["num_layers"])
    # Matmul weights stored in bf16 (half the HBM/VMEM traffic, 2x MXU rate);
    # LN params, biases and embeddings stay f32 for VPU-side math.
    params = {
        "token_emb": nrm(keys[0], (V, H)),                               # frozen embed_in copy
        "adapter": nrm(keys[1], (cfg["adapter_size"], H), 0.002),        # randn * 0.002
        "lnf_g": jnp.ones((H,), jnp.float32),
        "lnf_b": jnp.zeros((H,), jnp.float32),
        "embed_out_w": nrm(keys[2], (H, V)).astype(jnp.bfloat16),
        "layers": [],
    }
    for l in range(cfg["num_layers"]):
        lk = jax.random.split(keys[4 + l], 8)
        params["layers"].append({
            "ln1_g": jnp.ones((H,), jnp.float32), "ln1_b": jnp.zeros((H,), jnp.float32),
            "ln2_g": jnp.ones((H,), jnp.float32), "ln2_b": jnp.zeros((H,), jnp.float32),
            "qkv_w": nrm(lk[0], (H, 3 * H)).astype(jnp.bfloat16),
            "qkv_b": nrm(lk[1], (3 * H,)),
            "attn_dense_w": nrm(lk[2], (H, H)).astype(jnp.bfloat16),
            "attn_dense_b": nrm(lk[3], (H,)),
            "fc1_w": nrm(lk[4], (H, I)).astype(jnp.bfloat16),
            "fc1_b": nrm(lk[5], (I,)),
            "fc2_w": nrm(lk[6], (I, H)).astype(jnp.bfloat16),
            "fc2_b": nrm(lk[7], (H,)),
        })
    return params


if __name__ == "__main__":
    head_dim = 8
    rotary_pct = 0.25  # GPT-NeoX default
    cfg = dict(
        vocab=64, hidden=32, num_heads=4, head_dim=head_dim, intermediate=128,
        num_layers=2, adapter_size=4, max_seq_len=16,
        rotary_ndims=int(head_dim * rotary_pct), eps=1e-5,
    )
    key = jax.random.PRNGKey(0)
    pkey, xkey = jax.random.split(key)
    params = init_params(pkey, cfg)

    x = jax.random.randint(xkey, (2, 8), 0, cfg["vocab"], dtype=jnp.int32)
    out = adapter_model_forward(params, x, cfg)
    out = jax.block_until_ready(out)

    assert out.shape == (2, cfg["adapter_size"] + 8, cfg["vocab"]), out.shape
    assert out.dtype == jnp.float32
    assert bool(jnp.all(jnp.isfinite(out)))
    print("KERNEL_OK")
</pallas_src>

<mosaic_0001>
module attributes {stable_mosaic.version = 11 : i64} {
  func.func @kernel(%arg0: i32, %arg1: i32, %arg2: memref<24x32xbf16, #tpu.memory_space<vmem>>, %arg3: memref<1x32xf32, #tpu.memory_space<vmem>>, %arg4: memref<1x32xf32, #tpu.memory_space<vmem>>, %arg5: memref<32x96xbf16, #tpu.memory_space<vmem>>, %arg6: memref<1x96xf32, #tpu.memory_space<vmem>>, %arg7: memref<24x96xbf16, #tpu.memory_space<vmem>>, %arg8: memref<24x32xbf16, #tpu.memory_space<vmem>>) attributes {dimension_semantics = [#tpu.dimension_semantics<parallel>, #tpu.dimension_semantics<arbitrary>], iteration_bounds = array<i64: 1, 1>, scalar_prefetch = 0 : i64, scratch_operands = 1 : i64, tpu.core_type = #tpu.core_type<tc>, window_params = [{transform_indices = @transform_0, window_bounds = array<i64: 24, 32>}, {pipeline_mode = #tpu.pipeline_mode<synchronous>, transform_indices = @transform_1, window_bounds = array<i64: 1, 32>}, {pipeline_mode = #tpu.pipeline_mode<synchronous>, transform_indices = @transform_2, window_bounds = array<i64: 1, 32>}, {transform_indices = @transform_3, window_bounds = array<i64: 32, 96>}, {transform_indices = @transform_4, window_bounds = array<i64: 1, 96>}, {transform_indices = @transform_5, window_bounds = array<i64: 24, 96>}]} {
    %c0_i32 = arith.constant 0 : i32
    %0 = arith.cmpi eq, %arg1, %c0_i32 : i32
    %1 = arith.extui %0 : i1 to i32
    %c0_i32_0 = arith.constant 0 : i32
    %2 = arith.cmpi ne, %1, %c0_i32_0 : i32
    scf.if %2 {
      %c0_8 = arith.constant 0 : index
      %c0_9 = arith.constant 0 : index
      %11 = vector.load %arg2[%c0_8, %c0_9] : memref<24x32xbf16, #tpu.memory_space<vmem>>, vector<24x32xbf16>
      %12 = arith.extf %11 : vector<24x32xbf16> to vector<24x32xf32>
      %cst_10 = arith.constant dense<0.000000e+00> : vector<24xf32>
      %13 = vector.multi_reduction <add>, %12, %cst_10 [1] : vector<24x32xf32> to vector<24xf32>
      %14 = vector.shape_cast %13 : vector<24xf32> to vector<24x1xf32>
      %cst_11 = arith.constant 3.200000e+01 : f32
      %15 = vector.broadcast %cst_11 : f32 to vector<24x1xf32>
      %16 = arith.divf %14, %15 : vector<24x1xf32>
      %17 = vector.broadcast %16 : vector<24x1xf32> to vector<24x32xf32>
      %18 = arith.subf %12, %17 : vector<24x32xf32>
      %19 = arith.mulf %18, %18 : vector<24x32xf32>
      %cst_12 = arith.constant dense<0.000000e+00> : vector<24xf32>
      %20 = vector.multi_reduction <add>, %19, %cst_12 [1] : vector<24x32xf32> to vector<24xf32>
      %21 = vector.shape_cast %20 : vector<24xf32> to vector<24x1xf32>
      %cst_13 = arith.constant 3.200000e+01 : f32
      %22 = vector.broadcast %cst_13 : f32 to vector<24x1xf32>
      %23 = arith.divf %21, %22 : vector<24x1xf32>
      %24 = vector.broadcast %16 : vector<24x1xf32> to vector<24x32xf32>
      %25 = arith.subf %12, %24 : vector<24x32xf32>
      %cst_14 = arith.constant 9.99999974E-6 : f32
      %26 = vector.broadcast %cst_14 : f32 to vector<24x1xf32>
      %27 = arith.addf %23, %26 : vector<24x1xf32>
      %28 = math.rsqrt %27 : vector<24x1xf32>
      %29 = vector.broadcast %28 : vector<24x1xf32> to vector<24x32xf32>
      %30 = arith.mulf %25, %29 : vector<24x32xf32>
      %c0_15 = arith.constant 0 : index
      %c0_16 = arith.constant 0 : index
      %31 = vector.load %arg3[%c0_15, %c0_16] : memref<1x32xf32, #tpu.memory_space<vmem>>, vector<1x32xf32>
      %32 = vector.broadcast %31 : vector<1x32xf32> to vector<24x32xf32>
      %33 = arith.mulf %30, %32 : vector<24x32xf32>
      %c0_17 = arith.constant 0 : index
      %c0_18 = arith.constant 0 : index
      %34 = vector.load %arg4[%c0_17, %c0_18] : memref<1x32xf32, #tpu.memory_space<vmem>>, vector<1x32xf32>
      %35 = vector.broadcast %34 : vector<1x32xf32> to vector<24x32xf32>
      %36 = arith.addf %33, %35 : vector<24x32xf32>
      %37 = arith.truncf %36 : vector<24x32xf32> to vector<24x32xbf16>
      %c0_19 = arith.constant 0 : index
      %c0_20 = arith.constant 0 : index
      %38 = vector.load %arg8[%c0_19, %c0_20] : memref<24x32xbf16, #tpu.memory_space<vmem>>, vector<24x32xbf16>
      tpu.vector_store %arg8[%c0_19, %c0_20], %37 {strides = array<i32>} : memref<24x32xbf16, #tpu.memory_space<vmem>>, vector<24x32xbf16>,
    } else {
    }
    %c0 = arith.constant 0 : index
    %c0_1 = arith.constant 0 : index
    %3 = vector.load %arg8[%c0, %c0_1] : memref<24x32xbf16, #tpu.memory_space<vmem>>, vector<24x32xbf16>
    %c0_2 = arith.constant 0 : index
    %c0_3 = arith.constant 0 : index
    %4 = vector.load %arg5[%c0_2, %c0_3] : memref<32x96xbf16, #tpu.memory_space<vmem>>, vector<32x96xbf16>
    %cst = arith.constant dense<0.000000e+00> : vector<24x96xf32>
    %5 = tpu.matmul %3, %4, %cst {dimension_numbers = #tpu.dot_dimension_numbers<[1], [0], [0], [1], [0, 0, 1, 1], [], []>} : vector<24x32xbf16>, vector<32x96xbf16>, vector<24x96xf32> -> vector<24x96xf32>
    %c0_4 = arith.constant 0 : index
    %c0_5 = arith.constant 0 : index
    %6 = vector.load %arg6[%c0_4, %c0_5] : memref<1x96xf32, #tpu.memory_space<vmem>>, vector<1x96xf32>
    %7 = vector.broadcast %6 : vector<1x96xf32> to vector<24x96xf32>
    %8 = arith.addf %5, %7 : vector<24x96xf32>
    %9 = arith.truncf %8 : vector<24x96xf32> to vector<24x96xbf16>
    %c0_6 = arith.constant 0 : index
    %c0_7 = arith.constant 0 : index
    %10 = vector.load %arg7[%c0_6, %c0_7] : memref<24x96xbf16, #tpu.memory_space<vmem>>, vector<24x96xbf16>
    tpu.vector_store %arg7[%c0_6, %c0_7], %9 {strides = array<i32>} : memref<24x96xbf16, #tpu.memory_space<vmem>>, vector<24x96xbf16>,
    return
  }
  func.func @transform_0(%arg0: i32, %arg1: i32) -> (i32, i32) {
    %c0_i32 = arith.constant 0 : i32
    %c0_i32_0 = arith.constant 0 : i32
    return %arg0, %c0_i32 : i32, i32
  }
  func.func @transform_1(%arg0: i32, %arg1: i32) -> (i32, i32) {
    %c0_i32 = arith.constant 0 : i32
    %c0_i32_0 = arith.constant 0 : i32
    %c0_i32_1 = arith.constant 0 : i32
    return %c0_i32, %c0_i32_0 : i32, i32
  }
  func.func @transform_2(%arg0: i32, %arg1: i32) -> (i32, i32) {
    %c0_i32 = arith.constant 0 : i32
    %c0_i32_0 = arith.constant 0 : i32
    %c0_i32_1 = arith.constant 0 : i32
    return %c0_i32, %c0_i32_0 : i32, i32
  }
  func.func @transform_3(%arg0: i32, %arg1: i32) -> (i32, i32) {
    %c0_i32 = arith.constant 0 : i32
    %c0_i32_0 = arith.constant 0 : i32
    return %c0_i32, %arg1 : i32, i32
  }
  func.func @transform_4(%arg0: i32, %arg1: i32) -> (i32, i32) {
    %c0_i32 = arith.constant 0 : i32
    %c0_i32_0 = arith.constant 0 : i32
    return %c0_i32, %arg1 : i32, i32
  }
  func.func @transform_5(%arg0: i32, %arg1: i32) -> (i32, i32) {
    %c0_i32 = arith.constant 0 : i32
    return %arg0, %arg1 : i32, i32
  }
}

</mosaic_0001>

<bundles_post_ra>
// kernel: tpu_custom_call.1
= control target key start
LH: loop header
LB: loop body
LE: loop exit
PB: predicated region body
PF: predicated region fallthrough
CT: control target
= control target key end

     0   :  { %10 = vsyncpa [#allocation4], 0  ;;  %s450_s0 = inlined_call_operand.hbm [shape: bf16[24,32], index: 0, kind: input, shape index: {}]   ;;  %s451_s1 = inlined_call_operand.vmem [shape: f32[1,32], index: 1, kind: input, shape index: {}]   ;;  %s452_s2 = inlined_call_operand.vmem [shape: f32[1,32], index: 2, kind: input, shape index: {}]   ;;  %s453_s3 = inlined_call_operand.hbm [shape: bf16[32,96], index: 3, kind: input, shape index: {}]   ;;  %s454_s4 = inlined_call_operand.vmem [shape: f32[1,96], index: 4, kind: input, shape index: {}]   ;;  %s455_s5 = inlined_call_operand.hbm [shape: bf16[24,96], index: 5, kind: output, shape index: {}]  }
   0x1   :  { %11 = vsyncpa [#allocation7], 0 }
   0x2   :  { %12 = vsyncpa [#allocation5], 0  ;;  %s380_s18 = smov [#allocation3]  }
   0x3   :  { %s18_s19 = sshll.u32 %s380_s18, 4  ;;  %s19_s19 = int_to_ptr.vmem [resolvable:$true] %s18_s19 }
   0x4   :  { %s322_s20 = scalar_lea.vmem %s19_s19, 192  ;;  %p327_p1 = scmp.lt.s32.totalorder %s19_s19, %s19_s19 }
   0x5   :  { %p323_p0 = scmp.ne.s32.totalorder %s19_s19, %s322_s20  ;;  %p328_p2 = scmp.lt.s32.totalorder %s322_s20, %s322_s20 }
   0x7   :  { %p329_p3 = por %p328_p2, %p327_p1 }
   0x9   :  { %p330_p4 = pnand %p329_p3, %p323_p0 }
   0xb   :  { %333 = shalt.err (!%p330_p4)
}
   0xc   :  { %s381_s21 = smov 64   ;;  %s382_s22 = smov 4  }
   0xd   :  { %24 = dma.hbm_to_vmem [thread:$0]  %s450_s0, 192, %s19_s19, [#allocation4], %s381_s21, %s381_s21, %s382_s22  }
   0xe   :  { %s383_s25 = smov [#allocation6]  }
   0xf   :  { %s34_s26 = sshll.u32 %s383_s25, 4  ;;  %s35_s26 = int_to_ptr.vmem [resolvable:$true] %s34_s26 }
  0x10   :  { %s342_s27 = scalar_lea.vmem %s35_s26, 256  ;;  %p347_p6 = scmp.lt.s32.totalorder %s35_s26, %s35_s26 }
  0x11   :  { %p343_p5 = scmp.ne.s32.totalorder %s35_s26, %s342_s27  ;;  %p348_p7 = scmp.lt.s32.totalorder %s342_s27, %s342_s27 }
  0x13   :  { %p349_p8 = por %p348_p7, %p347_p6 }
  0x15   :  { %p350_p9 = pnand %p349_p8, %p343_p5 }
  0x17   :  { %353 = shalt.err (!%p350_p9)
}
  0x18   :  { %40 = dma.hbm_to_vmem [thread:$0]  %s453_s3, 256, %s35_s26, [#allocation7], %s381_s21, %s381_s21, %s382_s22  }
  0x19   :  { %374 = dma.done.wait [#allocation4], 192  }
  0x1a   :  { %375 = vsyncadd [#allocation4], 4294967104 }
  0x1b   :  { %376 = dma.done.wait [#allocation7], 256  }
  0x1c   :  { %377 = vsyncadd [#allocation7], 4294967040  ;;  %v284_v0 = vld [vmem:[#allocation3] sm:$0xff]   ;;  %vm60_vm0 = vcmask 261120   ;;  %v56_v1 = vld [vmem:[#allocation3 + $0x8] sm:$0xf] }
  0x1d   :  { %v285_v2 = vunpack.c.l.bf16 %v284_v0  ;;  %v59_v3 = vunpack.c.l.bf16 %v56_v1  ;;  %v286_v4 = vunpack.c.h.bf16 %v284_v0  ;;  %v304_v23 = vld [vmem:[#allocation6 + $0x8] sm:$0xff]   ;;  %v305_v24 = vld [vmem:[#allocation6] sm:$0xff]   ;;  %vm134_vm1 = vcmask 257024   ;;  %s384_s7 = smov [#allocation8]  }
  0x1e   :  { %291 = vmatprep.subr.bf16.mxu0 %v304_v23  ;;  %v262_v35 = vld [vmem:[%s451_s1] ss:$0 sm:$0xff]  ;;  %vm240_vm2 = vcmask 781312   ;;  %s249_s8 = sshll.u32 %s384_s7, 4  ;;  %s250_s8 = int_to_ptr.vmem [resolvable:$true] %s249_s8 }
  0x1f   :  { %v61_v5 = vsel %vm60_vm0, %v285_v2, 0.0  ;;  %v67_v6 = vsel %vm60_vm0, %v59_v3, 0.0  ;;  %v64_v7 = vsel %vm60_vm0, %v286_v4, 0.0  ;;  %292 = vmatpush3.bf16.msra.mxu0 %v304_v23  ;;  %v263_v37 = vld [vmem:[%s452_s2] ss:$0 sm:$0xff]  ;;  %s354_s9 = scalar_lea.vmem %s250_s8, 192  ;;  %p359_p11 = scmp.lt.s32.totalorder %s250_s8, %s250_s8 }
  0x20   :  { %62 = vadd.xlane.f32.xlu0 %v61_v5  ;;  %68 = vadd.xlane.f32.xlu1 %v67_v6  ;;  %v267_v53 = vld [vmem:[%s454_s4] ss:$0 sm:$0xff]  ;;  %p355_p10 = scmp.ne.s32.totalorder %s250_s8, %s354_s9  ;;  %p360_p12 = scmp.lt.s32.totalorder %s354_s9, %s354_s9 }
  0x21   :  { %293 = vmatprep.subr.bf16.mxu0 %v305_v24 }
  0x22   :  { %p361_p13 = por %p360_p12, %p359_p11 }
  0x23   :  { %294 = vmatpush3.bf16.msra.mxu0 %v305_v24 }
  0x24   :  { %65 = vadd.xlane.f32.xlu0 %v64_v7  ;;  %p362_p0 = pnand %p361_p13, %p355_p10 }
  0xa9   :  { %v63_v8 = vpop.xlane.xlu0 %62  ;;  %v69_v9 = vpop.xlane.xlu1 %68 }
  0xaa   :  { %v71_v10 = vmul.f32 0.03125, %v63_v8  ;;  %v73_v11 = vmul.f32 0.03125, %v69_v9 }
  0xac   :  { %v74_v12 = vsub.f32 %v285_v2, %v71_v10  ;;  %v76_v13 = vsub.f32 %v59_v3, %v73_v11 }
  0xad   :  { %v66_v14 = vpop.xlane.xlu0 %65 }
  0xae   :  { %v72_v15 = vmul.f32 0.03125, %v66_v14  ;;  %v77_v16 = vmul.f32 %v74_v12, %v74_v12  ;;  %v79_v17 = vmul.f32 %v76_v13, %v76_v13 }
  0xb0   :  { %v75_v18 = vsub.f32 %v286_v4, %v72_v15  ;;  %v80_v19 = vsel %vm60_vm0, %v77_v16, 0.0  ;;  %v86_v20 = vsel %vm60_vm0, %v79_v17, 0.0 }
  0xb1   :  { %81 = vadd.xlane.f32.xlu1 %v80_v19 }
  0xb2   :  { %v78_v21 = vmul.f32 %v75_v18, %v75_v18 }
  0xb4   :  { %v83_v22 = vsel %vm60_vm0, %v78_v21, 0.0 }
  0xb5   :  { %87 = vadd.xlane.f32.xlu1 %v86_v20  ;;  %84 = vadd.xlane.f32.xlu0 %v83_v22 }
 0x13a   :  { %v82_v25 = vpop.xlane.xlu1 %81 }
 0x13b   :  { %v89_v26 = vmul.f32 0.03125, %v82_v25 }
 0x13d   :  { %v92_v27 = vadd.f32 1e-05, %v89_v26 }
 0x13e   :  { %v88_v28 = vpop.xlane.xlu1 %87  ;;  %v85_v29 = vpop.xlane.xlu0 %84 }
 0x13f   :  { %308 = vrsqrt.f32 %v92_v27  ;;  %v91_v30 = vmul.f32 0.03125, %v88_v28  ;;  %v90_v31 = vmul.f32 0.03125, %v85_v29 }
 0x141   :  { %v94_v32 = vadd.f32 1e-05, %v91_v30  ;;  %v93_v33 = vadd.f32 1e-05, %v90_v31 }
 0x143   :  { %310 = vrsqrt.f32 %v94_v32 }
 0x144   :  { %312 = vrsqrt.f32 %v93_v33 }
 0x14c   :  { %v309_v34 = vpop.eup %308 }
 0x14d   :  { %v98_v36 = vmul.f32 %v309_v34, %v74_v12 }
 0x14f   :  { %v108_v38 = vmul.f32 %v262_v35, %v98_v36 }
 0x150   :  { %v311_v39 = vpop.eup %310 }
 0x151   :  { %v313_v40 = vpop.eup %312  ;;  %v118_v41 = vadd.f32 %v263_v37, %v108_v38  ;;  %v100_v42 = vmul.f32 %v311_v39, %v76_v13 }
 0x152   :  { %v99_v43 = vmul.f32 %v313_v40, %v75_v18 }
 0x153   :  { %v277_v44 = vpack.c.bf16 %v118_v41, %v118_v41  ;;  %v110_v45 = vmul.f32 %v262_v35, %v100_v42 }
 0x154   :  { %v109_v46 = vmul.f32 %v262_v35, %v99_v43 }
 0x155   :  { %135 = vst.msk [vmem:[#allocation2] sm:$0xf] %vm134_vm1, %v277_v44  ;;  %v120_v47 = vadd.f32 %v263_v37, %v110_v45 }
 0x156   :  { %v119_v48 = vadd.f32 %v263_v37, %v109_v46 }
 0x157   :  { %v279_v49 = vpack.c.bf16 %v120_v47, %v120_v47 }
 0x158   :  { %v278_v50 = vpack.c.bf16 %v119_v48, %v119_v48 }
 0x159   :  { %137 = vst.msk [vmem:[#allocation2 + $0x8] sm:$0xf] %vm134_vm1, %v279_v49 }
 0x15a   :  { %136 = vst.msk [vmem:[#allocation2 + $0x4] sm:$0xf] %vm134_vm1, %v278_v50 }
 0x160   :  { %v307_v51 = vld [vmem:[#allocation2 + $0x8] ss:$0 sps:$4 sm:$0xff]  }
 0x161   :  { %v306_v52 = vld [vmem:[#allocation2] sm:$0xff]  }
 0x162   :  { %295 = vmatprep.mubr.msk.bf16.mxu0 %vm60_vm0, %v306_v52 }
 0x163   :  { %296 = vmatmul.mubr.msk.bf16.vlgmr.msra.gmra.mxu0 %vm60_vm0, %v307_v51 }
 0x223   :  { %v297_v54 = vpop.f32.mrf.mxu0 }
 0x224   :  { %v222_v55 = vadd.f32 %v297_v54, %v267_v53 }
 0x225   :  { %v213_v56 = vpop.f32.mrf.mxu0 }
 0x226   :  { %v282_v57 = vpack.c.bf16 %v222_v55, %v222_v55  ;;  %v214_v58 = vadd.f32 %v267_v53, %v213_v56 }
 0x227   :  { %v298_v59 = vpop.f32.mrf.mxu0 }
 0x228   :  { %243 = vst.msk [vmem:[#allocation8 + $0x8] sm:$0xf] %vm240_vm2, %v282_v57  ;;  %v280_v60 = vpack.c.bf16 %v214_v58, %v214_v58 }
 0x229   :  { %v216_v61 = vpop.f32.mrf.mxu0 }
 0x22a   :  { %241 = vst.msk [vmem:[#allocation8] sm:$0xf] %vm240_vm2, %v280_v60  ;;  %v217_v62 = vadd.f32 %v267_v53, %v216_v61 }
 0x22c   :  { %v281_v63 = vpack.c.bf16 %v217_v62, %v217_v62 }
 0x22e   :  { %242 = vst.msk [vmem:[#allocation8 + $0x4] sm:$0xf] %vm240_vm2, %v281_v63 }
 0x22f   :  { %365 = shalt.err (!%p362_p0)
}
 0x230   :  { %255 = dma.vmem_to_hbm [thread:$0]  %s250_s8, 192, %s455_s5, [#allocation5], %s381_s21, %s381_s21, %s382_s22  }
 0x231   :  { %378 = dma.done.wait [#allocation5], 192  }
 0x232   :  { %379 = vsyncadd [#allocation5], 4294967104 }
 0x233   :  { %259 = vsyncpa [#allocation4], 1 }
 0x234   :  { %260 = vsyncpa [#allocation7], 1 }
 0x235   :  { %261 = vsyncpa [#allocation5], 1 }

</bundles_post_ra>
